<compile_context>
chip_gen: v7x
topology: tpu7x:2x2x1
jax: 0.10.0
libtpu: 0.0.40
codegen_flags: <defaults>
</compile_context>

<pallas_src>
import functools

import jax
import jax.numpy as jnp
import numpy as np
from jax.experimental import pallas as pl
from jax.experimental.pallas import tpu as pltpu

BN_EPS = 1e-5
HALO = 4   # zero rows above/below every image chunk in the slab (>= 1 needed)


def _chunk_rows(img_h):
    """Rows per image chunk in the padded slab: HALO + H + HALO."""
    return img_h + 2 * HALO


# ---------------------------------------------------------------------------
# wrapper-side (one-time) parameter preparation
# ---------------------------------------------------------------------------
def _band_conv_weights(w, img_w):
    """(3,3,Cin,Cout) HWIO -> (3, W*Cin, W*Cout) block-banded matrices.

    wb[dy][(x+dx-1)*Cin + ci, x*Cout + co] = w[dy, dx, ci, co]; taps that would
    read the horizontal zero padding are dropped (they contribute nothing), so
    the whole dx loop collapses into one MXU matmul per vertical tap dy.

    TODO(synk): this is a small-Cin/small-W workaround (K = W*Cin fills the MXU
    when Cin is tiny); at Cin >= ~128 use a per-tap (M=tile_rows*W, K=Cin,
    N=Cout) formulation instead (dx shifts via pltpu.roll on the lane axis).
    """
    w_np = np.asarray(w, dtype=np.float32)
    cin, cout = w_np.shape[2], w_np.shape[3]
    wb = np.zeros((3, img_w * cin, img_w * cout), np.float32)
    for dy in range(3):
        for dx in range(3):
            for x in range(img_w):
                xs = x + dx - 1            # input column feeding output column x
                if 0 <= xs < img_w:
                    wb[dy, xs * cin:(xs + 1) * cin,
                       x * cout:(x + 1) * cout] = w_np[dy, dx]
    return jnp.asarray(wb)


def _pick_images_per_tile(n_imgs, chunk, k_lanes, m_lanes, wb_bytes, *,
                          target_rows=256, vmem_budget=24 << 20):
    """Images per row tile: target >= `target_rows` matmul rows (fills the
    128/256-deep MXU M dimension), bounded by a VMEM streaming budget and N."""
    per_row = 2 * 4 * (k_lanes + 2 * m_lanes + 1)      # double-buffered f32 tiles
    budget_rows = max(chunk, (vmem_budget - wb_bytes) // per_row)
    ipt = max(1, min(target_rows, budget_rows) // chunk)
    ipt = min(ipt, n_imgs)
    while n_imgs % ipt:
        ipt -= 1
    return ipt


def _vmem_limit_bytes(working_set_bytes):
    """Derived from the actual per-phase working set (not a hard-coded 32 MiB),
    with headroom, capped so the plan stays inside v7x's 64 MiB VMEM."""
    return int(min(max(4 * working_set_bytes, 8 << 20), 48 << 20))


# ---------------------------------------------------------------------------
# kernels
# ---------------------------------------------------------------------------
def _conv_stats_kernel(x_ref, wb_ref, mask_ref, conv_ref, psums_ref, *,
                       mxu_dtype):
    """Phase 1: 3x3 conv of one row tile (3 banded MXU matmuls; vertical taps
    via sublane roll), write the pre-BN conv tile, emit this tile's masked
    per-lane sum / sum-of-squares.  No cross-step state -> grid is 'parallel'.
    """
    x = x_ref[...]                                   # (T, W*Cin) f32
    rows = x.shape[0]
    acc = None
    # TODO(synk): on v6e/v7x the three dy taps can be folded into a single
    # K=3*W*Cin matmul (concat the rolled copies along lanes) to fill the
    # 256-deep MXU; kept as 3 matmuls here (neutral on v5e's 128-deep array).
    for dy in range(3):
        # Output row i needs input row i + dy - 1.  A circular sublane roll is
        # exact here: every image chunk carries >=1 zero halo row on each side
        # and the wrapped rows only land on (masked) halo output rows.
        shift = (1 - dy) % rows
        lhs = x if shift == 0 else pltpu.roll(x, shift, 0)
        term = jnp.dot(lhs.astype(mxu_dtype), wb_ref[dy],
                       preferred_element_type=jnp.float32)
        acc = term if acc is None else acc + term
    conv_ref[...] = acc                              # pre-BN conv (halo rows = bleed)

    masked = acc * mask_ref[...]                     # zero out halo rows for stats
    # TODO(synk): E[x^2]-mean^2 in f32 can cancel if |mean| >> std at scale;
    # switch to shifted sums (per-lane pilot mean) if that regime appears.
    sums = jnp.concatenate(
        [jnp.sum(masked, axis=0, keepdims=True),
         jnp.sum(masked * acc, axis=0, keepdims=True)], axis=0)   # (2, W*Cout)
    psums_ref[0] = sums


def _bn_relu_kernel(conv_ref, scale_ref, shift_ref, mask_ref, out_ref):
    """Phase 2: pure elementwise fused BN scale/shift + ReLU over the pre-BN
    conv slab (no conv recompute); halo rows are forced back to zero so the
    output slab is directly the next layer's padded input."""
    y = jnp.maximum(conv_ref[...] * scale_ref[...] + shift_ref[...], 0.0)
    out_ref[...] = jnp.where(mask_ref[...] != 0.0, y, 0.0).astype(out_ref.dtype)


# ---------------------------------------------------------------------------
# layer / block wrappers
# ---------------------------------------------------------------------------
def scaling_layer_forward_slab(slab, mask, wb, gamma, beta, *,
                               n_imgs, img_h, img_w,
                               images_per_tile=None, mxu_dtype=jnp.float32):
    """One scaling_layer on the padded lane-dense slab:
    relu(batchnorm(conv3x3(x))).  slab: (N*(H+2*HALO), W*Cin) f32 with zero
    halo rows; returns the same layout with Cout channels."""
    rows_pad, k = slab.shape
    chunk = _chunk_rows(img_h)
    assert rows_pad == n_imgs * chunk
    cout = gamma.shape[0]
    m = img_w * cout

    wb = wb.astype(mxu_dtype)                        # bf16 feed on v6e/v7x
    wb_bytes = int(np.prod(wb.shape)) * jnp.dtype(mxu_dtype).itemsize
    ipt = (images_per_tile if images_per_tile is not None
           else _pick_images_per_tile(n_imgs, chunk, k, m, wb_bytes))
    assert n_imgs % ipt == 0
    tile_rows = ipt * chunk
    n_tiles = n_imgs // ipt

    row_in_spec = pl.BlockSpec((tile_rows, k), lambda t: (t, 0))
    row_out_spec = pl.BlockSpec((tile_rows, m), lambda t: (t, 0))
    mask_spec = pl.BlockSpec((tile_rows, 1), lambda t: (t, 0))
    # Constant-index operands: single-buffered (no re-DMA, no 2x VMEM charge).
    wb_spec = pl.BlockSpec(tuple(wb.shape), lambda t: (0, 0, 0),
                           pipeline_mode=pl.Buffered(1))
    vec_spec = pl.BlockSpec((1, m), lambda t: (0, 0),
                            pipeline_mode=pl.Buffered(1))

    # --- phase 1: conv (written once) + per-tile BN partial sums -------------
    p1_bytes = (2 * tile_rows * k * 4 + wb_bytes + 2 * tile_rows * 4
                + 2 * tile_rows * m * 4 + 2 * 2 * m * 4)
    conv_slab, psums = pl.pallas_call(
        functools.partial(_conv_stats_kernel, mxu_dtype=mxu_dtype),
        grid=(n_tiles,),
        in_specs=[row_in_spec, wb_spec, mask_spec],
        out_specs=[row_out_spec,
                   pl.BlockSpec((1, 2, m), lambda t: (t, 0, 0))],
        out_shape=(jax.ShapeDtypeStruct((rows_pad, m), jnp.float32),
                   jax.ShapeDtypeStruct((n_tiles, 2, m), jnp.float32)),
        compiler_params=pltpu.CompilerParams(
            dimension_semantics=("parallel",),
            vmem_limit_bytes=_vmem_limit_bytes(p1_bytes)),
    )(slab, wb, mask)

    # --- per-channel BN finalize: O(Cout) work, kept in XLA so the kernels
    #     stay free of lane<->sublane relayouts ------------------------------
    count = jnp.float32(n_imgs * img_h * img_w)
    tot = jnp.sum(psums, axis=0).reshape(2, img_w, cout).sum(axis=1)  # (2, Cout)
    mean = tot[0] / count
    var = jnp.maximum(tot[1] / count - mean * mean, 0.0)
    inv_std = jax.lax.rsqrt(var + BN_EPS)
    scale_c = gamma * inv_std
    shift_c = beta - mean * scale_c
    scale_row = jnp.tile(scale_c, img_w).reshape(1, m)   # lane j -> channel j % Cout
    shift_row = jnp.tile(shift_c, img_w).reshape(1, m)

    # --- phase 2: elementwise fused scale/shift + ReLU (no conv recompute) ---
    p2_bytes = 4 * tile_rows * m * 4 + 2 * m * 4 + 2 * tile_rows * 4
    return pl.pallas_call(
        _bn_relu_kernel,
        grid=(n_tiles,),
        in_specs=[row_out_spec, vec_spec, vec_spec, mask_spec],
        out_specs=row_out_spec,
        out_shape=jax.ShapeDtypeStruct((rows_pad, m), jnp.float32),
        compiler_params=pltpu.CompilerParams(
            dimension_semantics=("parallel",),
            vmem_limit_bytes=_vmem_limit_bytes(p2_bytes)),
    )(conv_slab, scale_row, shift_row, mask)


def scaling_block_forward(x_nchw, layer_params, *, images_per_tile=None,
                          mxu_dtype=jnp.float32):
    """scaling_block forward.  Activations stay in the lane-dense padded slab
    (N*(H+2*HALO), W*C) between layers (row = chunk row, lane = x*C + c); each
    image chunk carries HALO zero rows above/below, so row tiles can span
    images and the vertical conv taps never need a cross-tile halo.  NCHW
    conversion + halo padding happen once per block."""
    n, c, img_h, img_w = x_nchw.shape
    assert img_h % 8 == 0, "image height must be a multiple of 8"
    chunk = _chunk_rows(img_h)

    x = jnp.transpose(x_nchw, (0, 2, 3, 1)).reshape(n, img_h, img_w * c)
    x = jnp.pad(x, ((0, 0), (HALO, HALO), (0, 0)))          # zero halo rows
    slab = x.reshape(n * chunk, img_w * c)

    row_mask = np.zeros((chunk, 1), np.float32)
    row_mask[HALO:HALO + img_h] = 1.0
    mask = jnp.asarray(np.tile(row_mask, (n, 1)))            # (N*chunk, 1)

    c_out = c
    for wb, gamma, beta in layer_params:
        c_out = gamma.shape[0]
        slab = scaling_layer_forward_slab(
            slab, mask, wb, gamma, beta, n_imgs=n, img_h=img_h, img_w=img_w,
            images_per_tile=images_per_tile, mxu_dtype=mxu_dtype)

    out = slab.reshape(n, chunk, img_w, c_out)[:, HALO:HALO + img_h]
    return jnp.transpose(out, (0, 3, 1, 2))


# ---------------------------------------------------------------------------
# parameters
# ---------------------------------------------------------------------------
def init_scaling_block_params(key, in_channels, out_channels, block_depth=1):
    """Deterministic synthetic parameters (conv w/b + BN gamma/beta) per layer."""
    params = []
    cin = in_channels
    for _ in range(block_depth):
        key, kw, kb, kg, kbe = jax.random.split(key, 5)
        fan_in = cin * 3 * 3
        w = jax.random.normal(kw, (3, 3, cin, out_channels), jnp.float32)
        w = w * (1.0 / np.sqrt(fan_in))
        b = 0.1 * jax.random.normal(kb, (out_channels,), jnp.float32)
        gamma = 1.0 + 0.1 * jax.random.normal(kg, (out_channels,), jnp.float32)
        beta = 0.1 * jax.random.normal(kbe, (out_channels,), jnp.float32)
        params.append((w, b, gamma, beta))
        cin = out_channels
    return params


def prepare_layer_params(raw_params, img_w):
    """Kernel-side params: banded conv weights; conv bias dropped (it is
    cancelled exactly by the training-mode BatchNorm mean subtraction)."""
    return [(_band_conv_weights(w, img_w), gamma, beta)
            for (w, _b, gamma, beta) in raw_params]


# ---------------------------------------------------------------------------
# pure-JAX reference (kept with the bias to validate the cancellation)
# ---------------------------------------------------------------------------
def _reference_layer(x_nchw, params):
    w, b, gamma, beta = params
    out = jax.lax.conv_general_dilated(
        x_nchw, w, window_strides=(1, 1), padding=((1, 1), (1, 1)),
        dimension_numbers=('NCHW', 'HWIO', 'NCHW'))
    out = out + b.reshape(1, -1, 1, 1)
    mean = out.mean(axis=(0, 2, 3), keepdims=True)
    var = ((out - mean) ** 2).mean(axis=(0, 2, 3), keepdims=True)
    xhat = (out - mean) * jax.lax.rsqrt(var + BN_EPS)
    y = xhat * gamma.reshape(1, -1, 1, 1) + beta.reshape(1, -1, 1, 1)
    return jnp.maximum(y, 0.0)


def _reference_block(x_nchw, layer_params):
    for p in layer_params:
        x_nchw = _reference_layer(x_nchw, p)
    return x_nchw


if __name__ == "__main__":
    # Shapes consistent with the module: NCHW input (2, 4, 16, 16),
    # scaling_block(in=4, out=8, block_depth=2).
    N, CIN, COUT, H, W = 2, 4, 8, 16, 16

    key = jax.random.PRNGKey(0)
    kx, kp = jax.random.split(key)
    x = jax.random.normal(kx, (N, CIN, H, W), jnp.float32)

    raw_params = init_scaling_block_params(kp, CIN, COUT, block_depth=2)
    kernel_params = prepare_layer_params(raw_params, W)
    ref = jax.block_until_ready(_reference_block(x, raw_params))

    # f32 MXU feed, auto tile (single big row tile spanning both images).
    fwd = jax.jit(functools.partial(scaling_block_forward,
                                    layer_params=kernel_params))
    out = jax.block_until_ready(fwd(x))
    np.testing.assert_allclose(np.asarray(out), np.asarray(ref),
                               rtol=2e-3, atol=2e-3)
    assert out.shape == (N, COUT, H, W)

    # Multi-tile path (1 image / tile -> 2 row tiles): exercises the per-tile
    # BN partial-sum reduction across grid steps.
    fwd_tiled = jax.jit(functools.partial(scaling_block_forward,
                                          layer_params=kernel_params,
                                          images_per_tile=1))
    out_tiled = jax.block_until_ready(fwd_tiled(x))
    np.testing.assert_allclose(np.asarray(out_tiled), np.asarray(ref),
                               rtol=2e-3, atol=2e-3)

    # bf16 MXU feed (v6e/v7x production path); f32 accumulation + BN math,
    # so only a loose check of the reduced-precision path.
    fwd_bf16 = jax.jit(functools.partial(scaling_block_forward,
                                         layer_params=kernel_params,
                                         mxu_dtype=jnp.bfloat16))
    out_bf16 = jax.block_until_ready(fwd_bf16(x))
    np.testing.assert_allclose(np.asarray(out_bf16), np.asarray(ref),
                               rtol=1e-1, atol=1e-1)

    print("KERNEL_OK")
</pallas_src>

<mosaic_0001>
module attributes {stable_mosaic.version = 11 : i64} {
  func.func @_conv_stats_kernel(%arg0: i32, %arg1: memref<48x64xf32, #tpu.memory_space<vmem>>, %arg2: memref<3x64x128xf32, #tpu.memory_space<vmem>>, %arg3: memref<48x1xf32, #tpu.memory_space<vmem>>, %arg4: memref<48x128xf32, #tpu.memory_space<vmem>>, %arg5: memref<1x2x128xf32, #tpu.memory_space<vmem>>) attributes {dimension_semantics = [#tpu.dimension_semantics<parallel>], iteration_bounds = array<i64: 1>, scalar_prefetch = 0 : i64, scratch_operands = 0 : i64, tpu.core_type = #tpu.core_type<tc>, window_params = [{transform_indices = @transform_0, window_bounds = array<i64: 48, 64>}, {pipeline_mode = #tpu.pipeline_mode<synchronous>, transform_indices = @transform_1, window_bounds = array<i64: 3, 64, 128>}, {transform_indices = @transform_2, window_bounds = array<i64: 48, 1>}, {transform_indices = @transform_3, window_bounds = array<i64: 48, 128>}, {transform_indices = @transform_4, window_bounds = array<i64: 1, 2, 128>}]} {
    %c0 = arith.constant 0 : index
    %c0_0 = arith.constant 0 : index
    %0 = vector.load %arg1[%c0, %c0_0] : memref<48x64xf32, #tpu.memory_space<vmem>>, vector<48x64xf32>
    %c1_i32 = arith.constant 1 : i32
    %1 = tpu.dynamic_rotate %0 by %c1_i32 dim 0 : vector<48x64xf32>, i32 -> vector<48x64xf32>
    %c0_1 = arith.constant 0 : index
    %c0_2 = arith.constant 0 : index
    %c0_3 = arith.constant 0 : index
    %2 = vector.load %arg2[%c0_1, %c0_2, %c0_3] : memref<3x64x128xf32, #tpu.memory_space<vmem>>, vector<1x64x128xf32>
    %3 = vector.shape_cast %2 : vector<1x64x128xf32> to vector<64x128xf32>
    %cst = arith.constant dense<0.000000e+00> : vector<48x128xf32>
    %4 = tpu.matmul %1, %3, %cst {dimension_numbers = #tpu.dot_dimension_numbers<[1], [0], [0], [1], [0, 0, 1, 1], [], []>} : vector<48x64xf32>, vector<64x128xf32>, vector<48x128xf32> -> vector<48x128xf32>
    %c1 = arith.constant 1 : index
    %c0_4 = arith.constant 0 : index
    %c0_5 = arith.constant 0 : index
    %5 = vector.load %arg2[%c1, %c0_4, %c0_5] : memref<3x64x128xf32, #tpu.memory_space<vmem>>, vector<1x64x128xf32>
    %6 = vector.shape_cast %5 : vector<1x64x128xf32> to vector<64x128xf32>
    %cst_6 = arith.constant dense<0.000000e+00> : vector<48x128xf32>
    %7 = tpu.matmul %0, %6, %cst_6 {dimension_numbers = #tpu.dot_dimension_numbers<[1], [0], [0], [1], [0, 0, 1, 1], [], []>} : vector<48x64xf32>, vector<64x128xf32>, vector<48x128xf32> -> vector<48x128xf32>
    %8 = arith.addf %4, %7 : vector<48x128xf32>
    %c47_i32 = arith.constant 47 : i32
    %9 = tpu.dynamic_rotate %0 by %c47_i32 dim 0 : vector<48x64xf32>, i32 -> vector<48x64xf32>
    %c2 = arith.constant 2 : index
    %c0_7 = arith.constant 0 : index
    %c0_8 = arith.constant 0 : index
    %10 = vector.load %arg2[%c2, %c0_7, %c0_8] : memref<3x64x128xf32, #tpu.memory_space<vmem>>, vector<1x64x128xf32>
    %11 = vector.shape_cast %10 : vector<1x64x128xf32> to vector<64x128xf32>
    %cst_9 = arith.constant dense<0.000000e+00> : vector<48x128xf32>
    %12 = tpu.matmul %9, %11, %cst_9 {dimension_numbers = #tpu.dot_dimension_numbers<[1], [0], [0], [1], [0, 0, 1, 1], [], []>} : vector<48x64xf32>, vector<64x128xf32>, vector<48x128xf32> -> vector<48x128xf32>
    %13 = arith.addf %8, %12 : vector<48x128xf32>
    %c0_10 = arith.constant 0 : index
    %c0_11 = arith.constant 0 : index
    %14 = vector.load %arg4[%c0_10, %c0_11] : memref<48x128xf32, #tpu.memory_space<vmem>>, vector<48x128xf32>
    tpu.vector_store %arg4[%c0_10, %c0_11], %13 {strides = array<i32>} : memref<48x128xf32, #tpu.memory_space<vmem>>, vector<48x128xf32>,
    %c0_12 = arith.constant 0 : index
    %c0_13 = arith.constant 0 : index
    %15 = vector.load %arg3[%c0_12, %c0_13] : memref<48x1xf32, #tpu.memory_space<vmem>>, vector<48x1xf32>
    %16 = vector.broadcast %15 : vector<48x1xf32> to vector<48x128xf32>
    %17 = arith.mulf %13, %16 : vector<48x128xf32>
    %cst_14 = arith.constant dense<0.000000e+00> : vector<128xf32>
    %18 = vector.multi_reduction <add>, %17, %cst_14 [0] : vector<48x128xf32> to vector<128xf32>
    %19 = vector.shape_cast %18 : vector<128xf32> to vector<1x128xf32>
    %20 = arith.mulf %17, %13 : vector<48x128xf32>
    %cst_15 = arith.constant dense<0.000000e+00> : vector<128xf32>
    %21 = vector.multi_reduction <add>, %20, %cst_15 [0] : vector<48x128xf32> to vector<128xf32>
    %22 = vector.shape_cast %21 : vector<128xf32> to vector<1x128xf32>
    %23 = tpu.concatenate %19, %22 in 0 : vector<1x128xf32>, vector<1x128xf32> -> vector<2x128xf32>
    %c0_16 = arith.constant 0 : index
    %c0_17 = arith.constant 0 : index
    %c0_18 = arith.constant 0 : index
    %24 = vector.load %arg5[%c0_16, %c0_17, %c0_18] : memref<1x2x128xf32, #tpu.memory_space<vmem>>, vector<1x2x128xf32>
    %25 = vector.shape_cast %24 : vector<1x2x128xf32> to vector<2x128xf32>
    %26 = vector.shape_cast %23 : vector<2x128xf32> to vector<1x2x128xf32>
    tpu.vector_store %arg5[%c0_16, %c0_17, %c0_18], %26 {strides = array<i32>} : memref<1x2x128xf32, #tpu.memory_space<vmem>>, vector<1x2x128xf32>,
    return
  }
  func.func @transform_0(%arg0: i32) -> (i32, i32) {
    %c0_i32 = arith.constant 0 : i32
    %c0_i32_0 = arith.constant 0 : i32
    return %arg0, %c0_i32 : i32, i32
  }
  func.func @transform_1(%arg0: i32) -> (i32, i32, i32) {
    %c0_i32 = arith.constant 0 : i32
    %c0_i32_0 = arith.constant 0 : i32
    %c0_i32_1 = arith.constant 0 : i32
    %c0_i32_2 = arith.constant 0 : i32
    return %c0_i32, %c0_i32_0, %c0_i32_1 : i32, i32, i32
  }
  func.func @transform_2(%arg0: i32) -> (i32, i32) {
    %c0_i32 = arith.constant 0 : i32
    %c0_i32_0 = arith.constant 0 : i32
    return %arg0, %c0_i32 : i32, i32
  }
  func.func @transform_3(%arg0: i32) -> (i32, i32) {
    %c0_i32 = arith.constant 0 : i32
    %c0_i32_0 = arith.constant 0 : i32
    return %arg0, %c0_i32 : i32, i32
  }
  func.func @transform_4(%arg0: i32) -> (i32, i32, i32) {
    %c0_i32 = arith.constant 0 : i32
    %c0_i32_0 = arith.constant 0 : i32
    %c0_i32_1 = arith.constant 0 : i32
    return %arg0, %c0_i32, %c0_i32_0 : i32, i32, i32
  }
}

module attributes {stable_mosaic.version = 11 : i64} {
  func.func @_bn_relu_kernel(%arg0: i32, %arg1: memref<48x128xf32, #tpu.memory_space<vmem>>, %arg2: memref<1x128xf32, #tpu.memory_space<vmem>>, %arg3: memref<1x128xf32, #tpu.memory_space<vmem>>, %arg4: memref<48x1xf32, #tpu.memory_space<vmem>>, %arg5: memref<48x128xf32, #tpu.memory_space<vmem>>) attributes {dimension_semantics = [#tpu.dimension_semantics<parallel>], iteration_bounds = array<i64: 1>, scalar_prefetch = 0 : i64, scratch_operands = 0 : i64, tpu.core_type = #tpu.core_type<tc>, window_params = [{transform_indices = @transform_0, window_bounds = array<i64: 48, 128>}, {pipeline_mode = #tpu.pipeline_mode<synchronous>, transform_indices = @transform_1, window_bounds = array<i64: 1, 128>}, {pipeline_mode = #tpu.pipeline_mode<synchronous>, transform_indices = @transform_2, window_bounds = array<i64: 1, 128>}, {transform_indices = @transform_3, window_bounds = array<i64: 48, 1>}, {transform_indices = @transform_4, window_bounds = array<i64: 48, 128>}]} {
    %c0 = arith.constant 0 : index
    %c0_0 = arith.constant 0 : index
    %0 = vector.load %arg1[%c0, %c0_0] : memref<48x128xf32, #tpu.memory_space<vmem>>, vector<48x128xf32>
    %c0_1 = arith.constant 0 : index
    %c0_2 = arith.constant 0 : index
    %1 = vector.load %arg2[%c0_1, %c0_2] : memref<1x128xf32, #tpu.memory_space<vmem>>, vector<1x128xf32>
    %2 = vector.broadcast %1 : vector<1x128xf32> to vector<48x128xf32>
    %3 = arith.mulf %0, %2 : vector<48x128xf32>
    %c0_3 = arith.constant 0 : index
    %c0_4 = arith.constant 0 : index
    %4 = vector.load %arg3[%c0_3, %c0_4] : memref<1x128xf32, #tpu.memory_space<vmem>>, vector<1x128xf32>
    %5 = vector.broadcast %4 : vector<1x128xf32> to vector<48x128xf32>
    %6 = arith.addf %3, %5 : vector<48x128xf32>
    %cst = arith.constant 0.000000e+00 : f32
    %7 = vector.broadcast %cst : f32 to vector<48x128xf32>
    %8 = arith.maximumf %6, %7 : vector<48x128xf32>
    %c0_5 = arith.constant 0 : index
    %c0_6 = arith.constant 0 : index
    %9 = vector.load %arg4[%c0_5, %c0_6] : memref<48x1xf32, #tpu.memory_space<vmem>>, vector<48x1xf32>
    %cst_7 = arith.constant 0.000000e+00 : f32
    %10 = vector.broadcast %cst_7 : f32 to vector<48x1xf32>
    %11 = arith.cmpf one, %9, %10 : vector<48x1xf32>
    %cst_8 = arith.constant 0.000000e+00 : f32
    %12 = vector.shape_cast %11 : vector<48x1xi1> to vector<48x1xi1>
    %13 = vector.broadcast %12 : vector<48x1xi1> to vector<48x128xi1>
    %14 = vector.broadcast %cst_8 : f32 to vector<48x128xf32>
    %15 = arith.select %13, %8, %14 : vector<48x128xi1>, vector<48x128xf32>
    %c0_9 = arith.constant 0 : index
    %c0_10 = arith.constant 0 : index
    %16 = vector.load %arg5[%c0_9, %c0_10] : memref<48x128xf32, #tpu.memory_space<vmem>>, vector<48x128xf32>
    tpu.vector_store %arg5[%c0_9, %c0_10], %15 {strides = array<i32>} : memref<48x128xf32, #tpu.memory_space<vmem>>, vector<48x128xf32>,
    return
  }
  func.func @transform_0(%arg0: i32) -> (i32, i32) {
    %c0_i32 = arith.constant 0 : i32
    %c0_i32_0 = arith.constant 0 : i32
    return %arg0, %c0_i32 : i32, i32
  }
  func.func @transform_1(%arg0: i32) -> (i32, i32) {
    %c0_i32 = arith.constant 0 : i32
    %c0_i32_0 = arith.constant 0 : i32
    %c0_i32_1 = arith.constant 0 : i32
    return %c0_i32, %c0_i32_0 : i32, i32
  }
  func.func @transform_2(%arg0: i32) -> (i32, i32) {
    %c0_i32 = arith.constant 0 : i32
    %c0_i32_0 = arith.constant 0 : i32
    %c0_i32_1 = arith.constant 0 : i32
    return %c0_i32, %c0_i32_0 : i32, i32
  }
  func.func @transform_3(%arg0: i32) -> (i32, i32) {
    %c0_i32 = arith.constant 0 : i32
    %c0_i32_0 = arith.constant 0 : i32
    return %arg0, %c0_i32 : i32, i32
  }
  func.func @transform_4(%arg0: i32) -> (i32, i32) {
    %c0_i32 = arith.constant 0 : i32
    %c0_i32_0 = arith.constant 0 : i32
    return %arg0, %c0_i32 : i32, i32
  }
}

module attributes {stable_mosaic.version = 11 : i64} {
  func.func @_conv_stats_kernel(%arg0: i32, %arg1: memref<48x128xf32, #tpu.memory_space<vmem>>, %arg2: memref<3x128x128xf32, #tpu.memory_space<vmem>>, %arg3: memref<48x1xf32, #tpu.memory_space<vmem>>, %arg4: memref<48x128xf32, #tpu.memory_space<vmem>>, %arg5: memref<1x2x128xf32, #tpu.memory_space<vmem>>) attributes {dimension_semantics = [#tpu.dimension_semantics<parallel>], iteration_bounds = array<i64: 1>, scalar_prefetch = 0 : i64, scratch_operands = 0 : i64, tpu.core_type = #tpu.core_type<tc>, window_params = [{transform_indices = @transform_0, window_bounds = array<i64: 48, 128>}, {pipeline_mode = #tpu.pipeline_mode<synchronous>, transform_indices = @transform_1, window_bounds = array<i64: 3, 128, 128>}, {transform_indices = @transform_2, window_bounds = array<i64: 48, 1>}, {transform_indices = @transform_3, window_bounds = array<i64: 48, 128>}, {transform_indices = @transform_4, window_bounds = array<i64: 1, 2, 128>}]} {
    %c0 = arith.constant 0 : index
    %c0_0 = arith.constant 0 : index
    %0 = vector.load %arg1[%c0, %c0_0] : memref<48x128xf32, #tpu.memory_space<vmem>>, vector<48x128xf32>
    %c1_i32 = arith.constant 1 : i32
    %1 = tpu.dynamic_rotate %0 by %c1_i32 dim 0 : vector<48x128xf32>, i32 -> vector<48x128xf32>
    %c0_1 = arith.constant 0 : index
    %c0_2 = arith.constant 0 : index
    %c0_3 = arith.constant 0 : index
    %2 = vector.load %arg2[%c0_1, %c0_2, %c0_3] : memref<3x128x128xf32, #tpu.memory_space<vmem>>, vector<1x128x128xf32>
    %3 = vector.shape_cast %2 : vector<1x128x128xf32> to vector<128x128xf32>
    %cst = arith.constant dense<0.000000e+00> : vector<48x128xf32>
    %4 = tpu.matmul %1, %3, %cst {dimension_numbers = #tpu.dot_dimension_numbers<[1], [0], [0], [1], [0, 0, 1, 1], [], []>} : vector<48x128xf32>, vector<128x128xf32>, vector<48x128xf32> -> vector<48x128xf32>
    %c1 = arith.constant 1 : index
    %c0_4 = arith.constant 0 : index
    %c0_5 = arith.constant 0 : index
    %5 = vector.load %arg2[%c1, %c0_4, %c0_5] : memref<3x128x128xf32, #tpu.memory_space<vmem>>, vector<1x128x128xf32>
    %6 = vector.shape_cast %5 : vector<1x128x128xf32> to vector<128x128xf32>
    %cst_6 = arith.constant dense<0.000000e+00> : vector<48x128xf32>
    %7 = tpu.matmul %0, %6, %cst_6 {dimension_numbers = #tpu.dot_dimension_numbers<[1], [0], [0], [1], [0, 0, 1, 1], [], []>} : vector<48x128xf32>, vector<128x128xf32>, vector<48x128xf32> -> vector<48x128xf32>
    %8 = arith.addf %4, %7 : vector<48x128xf32>
    %c47_i32 = arith.constant 47 : i32
    %9 = tpu.dynamic_rotate %0 by %c47_i32 dim 0 : vector<48x128xf32>, i32 -> vector<48x128xf32>
    %c2 = arith.constant 2 : index
    %c0_7 = arith.constant 0 : index
    %c0_8 = arith.constant 0 : index
    %10 = vector.load %arg2[%c2, %c0_7, %c0_8] : memref<3x128x128xf32, #tpu.memory_space<vmem>>, vector<1x128x128xf32>
    %11 = vector.shape_cast %10 : vector<1x128x128xf32> to vector<128x128xf32>
    %cst_9 = arith.constant dense<0.000000e+00> : vector<48x128xf32>
    %12 = tpu.matmul %9, %11, %cst_9 {dimension_numbers = #tpu.dot_dimension_numbers<[1], [0], [0], [1], [0, 0, 1, 1], [], []>} : vector<48x128xf32>, vector<128x128xf32>, vector<48x128xf32> -> vector<48x128xf32>
    %13 = arith.addf %8, %12 : vector<48x128xf32>
    %c0_10 = arith.constant 0 : index
    %c0_11 = arith.constant 0 : index
    %14 = vector.load %arg4[%c0_10, %c0_11] : memref<48x128xf32, #tpu.memory_space<vmem>>, vector<48x128xf32>
    tpu.vector_store %arg4[%c0_10, %c0_11], %13 {strides = array<i32>} : memref<48x128xf32, #tpu.memory_space<vmem>>, vector<48x128xf32>,
    %c0_12 = arith.constant 0 : index
    %c0_13 = arith.constant 0 : index
    %15 = vector.load %arg3[%c0_12, %c0_13] : memref<48x1xf32, #tpu.memory_space<vmem>>, vector<48x1xf32>
    %16 = vector.broadcast %15 : vector<48x1xf32> to vector<48x128xf32>
    %17 = arith.mulf %13, %16 : vector<48x128xf32>
    %cst_14 = arith.constant dense<0.000000e+00> : vector<128xf32>
    %18 = vector.multi_reduction <add>, %17, %cst_14 [0] : vector<48x128xf32> to vector<128xf32>
    %19 = vector.shape_cast %18 : vector<128xf32> to vector<1x128xf32>
    %20 = arith.mulf %17, %13 : vector<48x128xf32>
    %cst_15 = arith.constant dense<0.000000e+00> : vector<128xf32>
    %21 = vector.multi_reduction <add>, %20, %cst_15 [0] : vector<48x128xf32> to vector<128xf32>
    %22 = vector.shape_cast %21 : vector<128xf32> to vector<1x128xf32>
    %23 = tpu.concatenate %19, %22 in 0 : vector<1x128xf32>, vector<1x128xf32> -> vector<2x128xf32>
    %c0_16 = arith.constant 0 : index
    %c0_17 = arith.constant 0 : index
    %c0_18 = arith.constant 0 : index
    %24 = vector.load %arg5[%c0_16, %c0_17, %c0_18] : memref<1x2x128xf32, #tpu.memory_space<vmem>>, vector<1x2x128xf32>
    %25 = vector.shape_cast %24 : vector<1x2x128xf32> to vector<2x128xf32>
    %26 = vector.shape_cast %23 : vector<2x128xf32> to vector<1x2x128xf32>
    tpu.vector_store %arg5[%c0_16, %c0_17, %c0_18], %26 {strides = array<i32>} : memref<1x2x128xf32, #tpu.memory_space<vmem>>, vector<1x2x128xf32>,
    return
  }
  func.func @transform_0(%arg0: i32) -> (i32, i32) {
    %c0_i32 = arith.constant 0 : i32
    %c0_i32_0 = arith.constant 0 : i32
    return %arg0, %c0_i32 : i32, i32
  }
  func.func @transform_1(%arg0: i32) -> (i32, i32, i32) {
    %c0_i32 = arith.constant 0 : i32
    %c0_i32_0 = arith.constant 0 : i32
    %c0_i32_1 = arith.constant 0 : i32
    %c0_i32_2 = arith.constant 0 : i32
    return %c0_i32, %c0_i32_0, %c0_i32_1 : i32, i32, i32
  }
  func.func @transform_2(%arg0: i32) -> (i32, i32) {
    %c0_i32 = arith.constant 0 : i32
    %c0_i32_0 = arith.constant 0 : i32
    return %arg0, %c0_i32 : i32, i32
  }
  func.func @transform_3(%arg0: i32) -> (i32, i32) {
    %c0_i32 = arith.constant 0 : i32
    %c0_i32_0 = arith.constant 0 : i32
    return %arg0, %c0_i32 : i32, i32
  }
  func.func @transform_4(%arg0: i32) -> (i32, i32, i32) {
    %c0_i32 = arith.constant 0 : i32
    %c0_i32_0 = arith.constant 0 : i32
    %c0_i32_1 = arith.constant 0 : i32
    return %arg0, %c0_i32, %c0_i32_0 : i32, i32, i32
  }
}

</mosaic_0001>

<bundles_post_ra>
// kernel: tile.23
= control target key start
LH: loop header
LB: loop body
LE: loop exit
PB: predicated region body
PF: predicated region fallthrough
CT: control target
= control target key end

     0   :  { %s28_s0 = inlined_call_operand.vmem [shape: f32[8], index: 0, kind: input, shape index: {}]   ;;  %s29_s1 = inlined_call_operand.vmem [shape: f32[16,8], index: 1, kind: output, shape index: {}]  }
   0x1   :  { %v4_v0 = vld [vmem:[%s28_s0] ss:$0 sm:$0xff] }
   0x2   :  { %5 = vst [vmem:[%s29_s1] sm:$0xff] %v4_v0  ;;  %8 = vst [vmem:[%s29_s1 + $0x8] sm:$0xff] %v4_v0 }

// kernel: tile.24
= control target key start
LH: loop header
LB: loop body
LE: loop exit
PB: predicated region body
PF: predicated region fallthrough
CT: control target
= control target key end

     0   :  { %s131_s10 = smov 120   ;;  %s132_s11 = smov 104   ;;  %vm3_vm0 = vcmask 64512   ;;  %vm9_vm1 = vcmask 1048512   ;;  %vm15_vm2 = vcmask 982912   ;;  %vm21_vm3 = vcmask 917312   ;;  %s207_s0 = inlined_call_operand.vmem [shape: f32[16,8], index: 0, kind: input, shape index: {}]   ;;  %s208_s1 = inlined_call_operand.vmem [shape: f32[1,128], index: 1, kind: output, shape index: {}]  }
   0x1   :  { %v101_v0 = vld [vmem:[%s207_s0 + $0xf] sm:$0x1]   ;;  %v103_v1 = vld [vmem:[%s207_s0 + $0xd] sm:$0x1]   ;;  %v102_v2 = vld [vmem:[%s207_s0 + $0xe] sm:$0x1]  }
   0x2   :  { %7 = vrot.lane.b32.xlu0 %v101_v0, %s131_s10  ;;  %19 = vrot.lane.b32.xlu1 %v103_v1, %s132_s11  ;;  %v104_v3 = vld [vmem:[%s207_s0 + $0xc] sm:$0x1]   ;;  %s133_s16 = smov 112   ;;  %s134_s17 = smov 96   ;;  %v105_v4 = vld [vmem:[%s207_s0 + $0xb] sm:$0x1]  }
   0x3   :  { %v106_v5 = vld [vmem:[%s207_s0 + $0xa] sm:$0x1]   ;;  %v2_v6 = vld [vmem:[%s207_s0] sm:$0x1]   ;;  %s135_s24 = smov 88   ;;  %s136_s25 = smov 80  }
   0x4   :  { %4 = vst.msk [vmem:[#allocation0] sm:$0x1] %vm3_vm0, %v2_v6   ;;  %v107_v7 = vld [vmem:[%s207_s0 + $0x9] sm:$0x1]   ;;  %v108_v8 = vld [vmem:[%s207_s0 + $0x8] sm:$0x1]  }
   0x5   :  { %s137_s30 = smov 72   ;;  %s138_s2 = smov 64   ;;  %v109_v9 = vld [vmem:[%s207_s0 + $0x7] sm:$0x1]   ;;  %v110_v10 = vld [vmem:[%s207_s0 + $0x6] sm:$0x1]  }
   0x6   :  { %13 = vrot.lane.b32.xlu0 %v102_v2, %s133_s16  ;;  %25 = vrot.lane.b32.xlu1 %v104_v3, %s134_s17  ;;  %s139_s7 = smov 56   ;;  %s140_s8 = smov 48   ;;  %v111_v11 = vld [vmem:[%s207_s0 + $0x5] sm:$0x1]   ;;  %v112_v12 = vld [vmem:[%s207_s0 + $0x4] sm:$0x1]  }
   0x7   :  { %s141_s13 = smov 40   ;;  %s142_s14 = smov 32   ;;  %v113_v13 = vld [vmem:[%s207_s0 + $0x3] sm:$0x1]   ;;  %v114_v14 = vld [vmem:[%s207_s0 + $0x2] sm:$0x1]  }
   0x8   :  { %s143_s19 = smov 24   ;;  %s144_s20 = smov 16   ;;  %v115_v15 = vld [vmem:[%s207_s0 + $0x1] sm:$0x1]   ;;  %vm27_vm4 = vcmask 851712   ;;  %vm33_vm5 = vcmask 786112  }
   0x9   :  { %s145_s0 = smov 8   ;;  %vm39_vm6 = vcmask 720512   ;;  %vm45_vm7 = vcmask 654912   ;;  %vm51_vm8 = vcmask 589312   ;;  %vm57_vm9 = vcmask 523712  }
   0xa   :  { %31 = vrot.lane.b32.xlu0 %v105_v4, %s135_s24  ;;  %37 = vrot.lane.b32.xlu1 %v106_v5, %s136_s25  ;;  %vm63_vm10 = vcmask 458112   ;;  %vm69_vm11 = vcmask 392512   ;;  %vm75_vm12 = vcmask 326912   ;;  %vm81_vm13 = vcmask 261312  }
   0xb   :  { %vm87_vm14 = vcmask 195712   ;;  %vm93_vm15 = vcmask 130112  }
   0xe   :  { %43 = vrot.lane.b32.xlu0 %v107_v7, %s137_s30  ;;  %49 = vrot.lane.b32.xlu1 %v108_v8, %s138_s2 }
  0x12   :  { %55 = vrot.lane.b32.xlu0 %v109_v9, %s139_s7  ;;  %61 = vrot.lane.b32.xlu1 %v110_v10, %s140_s8 }
  0x16   :  { %67 = vrot.lane.b32.xlu0 %v111_v11, %s141_s13  ;;  %73 = vrot.lane.b32.xlu1 %v112_v12, %s142_s14 }
  0x1a   :  { %79 = vrot.lane.b32.xlu0 %v113_v13, %s143_s19  ;;  %85 = vrot.lane.b32.xlu1 %v114_v14, %s144_s20 }
  0x1e   :  { %91 = vrot.lane.b32.xlu0 %v115_v15, %s145_s0 }
  0x74   :  { %v8_v16 = vpop.permute.xlu0 %7   ;;  %v20_v17 = vpop.permute.xlu1 %19  }
  0x75   :  { %10 = vst.msk [vmem:[#allocation0] sm:$0x1] %vm9_vm1, %v8_v16  }
  0x78   :  { %v14_v18 = vpop.permute.xlu0 %13   ;;  %v26_v19 = vpop.permute.xlu1 %25  }
  0x79   :  { %16 = vst.msk [vmem:[#allocation0] sm:$0x1] %vm15_vm2, %v14_v18  }
  0x7a   :  { %22 = vst.msk [vmem:[#allocation0] sm:$0x1] %vm21_vm3, %v20_v17  }
  0x7b   :  { %28 = vst.msk [vmem:[#allocation0] sm:$0x1] %vm27_vm4, %v26_v19  }
  0x7c   :  { %v32_v20 = vpop.permute.xlu0 %31   ;;  %v38_v21 = vpop.permute.xlu1 %37  }
  0x7d   :  { %34 = vst.msk [vmem:[#allocation0] sm:$0x1] %vm33_vm5, %v32_v20  }
  0x7e   :  { %40 = vst.msk [vmem:[#allocation0] sm:$0x1] %vm39_vm6, %v38_v21  }
  0x80   :  { %v44_v22 = vpop.permute.xlu0 %43   ;;  %v50_v23 = vpop.permute.xlu1 %49  }
  0x81   :  { %46 = vst.msk [vmem:[#allocation0] sm:$0x1] %vm45_vm7, %v44_v22  }
  0x82   :  { %52 = vst.msk [vmem:[#allocation0] sm:$0x1] %vm51_vm8, %v50_v23  }
  0x84   :  { %v56_v24 = vpop.permute.xlu0 %55   ;;  %v62_v25 = vpop.permute.xlu1 %61  }
  0x85   :  { %58 = vst.msk [vmem:[#allocation0] sm:$0x1] %vm57_vm9, %v56_v24  }
  0x86   :  { %64 = vst.msk [vmem:[#allocation0] sm:$0x1] %vm63_vm10, %v62_v25  }
  0x88   :  { %v68_v26 = vpop.permute.xlu0 %67   ;;  %v74_v27 = vpop.permute.xlu1 %73  }
  0x89   :  { %70 = vst.msk [vmem:[#allocation0] sm:$0x1] %vm69_vm11, %v68_v26  }
  0x8a   :  { %76 = vst.msk [vmem:[#allocation0] sm:$0x1] %vm75_vm12, %v74_v27  }
  0x8c   :  { %v80_v28 = vpop.permute.xlu0 %79   ;;  %v86_v29 = vpop.permute.xlu1 %85  }
  0x8d   :  { %82 = vst.msk [vmem:[#allocation0] sm:$0x1] %vm81_vm13, %v80_v28  }
  0x8e   :  { %88 = vst.msk [vmem:[#allocation0] sm:$0x1] %vm87_vm14, %v86_v29  }
  0x90   :  { %v92_v30 = vpop.permute.xlu0 %91  }
  0x91   :  { %94 = vst.msk [vmem:[#allocation0] sm:$0x1] %vm93_vm15, %v92_v30  }
  0x98   :  { %v98_v31 = vld [vmem:[#allocation0] sm:$0x1] }
  0x99   :  { %100 = vst [vmem:[%s208_s1] sm:$0x1] %v98_v31 }

// kernel: scaling_block_forward.5
= control target key start
LH: loop header
LB: loop body
LE: loop exit
PB: predicated region body
PF: predicated region fallthrough
CT: control target
= control target key end

     0   :  { %v118_v0 = vmov 0   ;;  %s204_s3 = inlined_call_operand.vmem [shape: f32[48,1], index: 3, kind: input, shape index: {}]   ;;  %s205_s0 = inlined_call_operand.vmem [shape: f32[48,128], index: 0, kind: input, shape index: {}]   ;;  %s206_s1 = inlined_call_operand.vmem [shape: f32[1,128], index: 1, kind: input, shape index: {}]   ;;  %s207_s2 = inlined_call_operand.vmem [shape: f32[1,128], index: 2, kind: input, shape index: {}]   ;;  %s208_s4 = inlined_call_operand.vmem [shape: f32[48,128], index: 4, kind: output, shape index: {}]  }
   0x1   :  { %117 = vset.pattern.permute.xlu1 %v118_v0  ;;  %116 = vset.pattern.permute.xlu0 %v118_v0  ;;  %v57_v1 = vld [vmem:[%s204_s3 + $0x10] sm:$0xff]  ;;  %v55_v2 = vld [vmem:[%s204_s3] sm:$0xff]  ;;  %v58_v3 = vld [vmem:[%s204_s3 + $0x18] sm:$0xff] }
   0x2   :  { %vm63_vm0 = vcmp.ne.f32.partialorder %v57_v1, 0.0  ;;  %vm61_vm1 = vcmp.ne.f32.partialorder %v55_v2, 0.0  ;;  %vm64_vm2 = vcmp.ne.f32.partialorder %v58_v3, 0.0  ;;  %v56_v4 = vld [vmem:[%s204_s3 + $0x8] sm:$0xff]  ;;  %v59_v8 = vld [vmem:[%s204_s3 + $0x20] sm:$0xff]  ;;  %v19_v13 = vld [vmem:[%s205_s0 + $0x10] sm:$0xff] }
   0x3   :  { %v69_v5 = vsel %vm63_vm0, 1, %v118_v0  ;;  %v67_v6 = vsel %vm61_vm1, 1, %v118_v0  ;;  %vm62_vm3 = vcmp.ne.f32.partialorder %v56_v4, 0.0  ;;  %v60_v7 = vld [vmem:[%s204_s3 + $0x28] sm:$0xff]  ;;  %v70_v9 = vsel %vm64_vm2, 1, %v118_v0  ;;  %v17_v15 = vld [vmem:[%s205_s0] sm:$0xff] }
   0x4   :  { %80 = vperm.xlu1 %117, %v69_v5   ;;  %74 = vperm.xlu0 %116, %v67_v6   ;;  %v68_v10 = vsel %vm62_vm3, 1, %v118_v0  ;;  %vm66_vm4 = vcmp.ne.f32.partialorder %v60_v7, 0.0  ;;  %vm65_vm5 = vcmp.ne.f32.partialorder %v59_v8, 0.0  ;;  %v113_v14 = vld [vmem:[%s206_s1] ss:$0 sm:$0xff]  ;;  %v20_v19 = vld [vmem:[%s205_s0 + $0x18] sm:$0xff] }
   0x5   :  { %v72_v11 = vsel %vm66_vm4, 1, %v118_v0  ;;  %v71_v12 = vsel %vm65_vm5, 1, %v118_v0  ;;  %v32_v16 = vmul.f32 %v113_v14, %v19_v13  ;;  %v30_v17 = vmul.f32 %v113_v14, %v17_v15  ;;  %v114_v18 = vld [vmem:[%s207_s2] ss:$0 sm:$0xff]  ;;  %v18_v20 = vld [vmem:[%s205_s0 + $0x8] sm:$0xff] }
   0x6   :  { %v33_v23 = vmul.f32 %v113_v14, %v20_v19  ;;  %v31_v24 = vmul.f32 %v113_v14, %v18_v20  ;;  %v22_v25 = vld [vmem:[%s205_s0 + $0x28] sm:$0xff]  ;;  %v21_v26 = vld [vmem:[%s205_s0 + $0x20] sm:$0xff] }
   0x7   :  { %v45_v21 = vadd.f32 %v114_v18, %v32_v16  ;;  %v43_v22 = vadd.f32 %v114_v18, %v30_v17  ;;  %v35_v27 = vmul.f32 %v113_v14, %v22_v25  ;;  %v34_v28 = vmul.f32 %v113_v14, %v21_v26 }
   0x8   :  { %83 = vperm.xlu1 %117, %v70_v9   ;;  %77 = vperm.xlu0 %116, %v68_v10   ;;  %v46_v31 = vadd.f32 %v114_v18, %v33_v23  ;;  %v44_v32 = vadd.f32 %v114_v18, %v31_v24 }
   0x9   :  { %v51_v29 = vmax.f32 %v45_v21, 0.0  ;;  %v49_v30 = vmax.f32 %v43_v22, 0.0  ;;  %v48_v35 = vadd.f32 %v114_v18, %v35_v27  ;;  %v47_v36 = vadd.f32 %v114_v18, %v34_v28 }
   0xa   :  { %v52_v39 = vmax.f32 %v46_v31, 0.0  ;;  %v50_v40 = vmax.f32 %v44_v32, 0.0 }
   0xb   :  { %v54_v45 = vmax.f32 %v48_v35, 0.0  ;;  %v53_v46 = vmax.f32 %v47_v36, 0.0 }
   0xc   :  { %89 = vperm.xlu1 %117, %v72_v11   ;;  %86 = vperm.xlu0 %116, %v71_v12  }
  0x83   :  { %v81_v33 = vpop.permute.xlu1 %80  ;;  %v75_v34 = vpop.permute.xlu0 %74 }
  0x84   :  { %vm93_vm6 = vcmp.eq.s32.totalorder %v81_v33, 1  ;;  %vm91_vm7 = vcmp.eq.s32.totalorder %v75_v34, 1 }
  0x85   :  { %v99_v37 = vsel %vm93_vm6, %v51_v29, 0.0  ;;  %v97_v38 = vsel %vm91_vm7, %v49_v30, 0.0 }
  0x86   :  { %105 = vst [vmem:[%s208_s4 + $0x10] sm:$0xff] %v99_v37  ;;  %103 = vst [vmem:[%s208_s4] sm:$0xff] %v97_v38 }
  0x87   :  { %v84_v41 = vpop.permute.xlu1 %83  ;;  %v78_v42 = vpop.permute.xlu0 %77 }
  0x88   :  { %vm94_vm8 = vcmp.eq.s32.totalorder %v84_v41, 1  ;;  %vm92_vm9 = vcmp.eq.s32.totalorder %v78_v42, 1 }
  0x89   :  { %v100_v43 = vsel %vm94_vm8, %v52_v39, 0.0  ;;  %v98_v44 = vsel %vm92_vm9, %v50_v40, 0.0 }
  0x8a   :  { %106 = vst [vmem:[%s208_s4 + $0x18] sm:$0xff] %v100_v43  ;;  %104 = vst [vmem:[%s208_s4 + $0x8] sm:$0xff] %v98_v44 }
  0x8b   :  { %v90_v47 = vpop.permute.xlu1 %89  ;;  %v87_v48 = vpop.permute.xlu0 %86 }
  0x8c   :  { %vm96_vm10 = vcmp.eq.s32.totalorder %v90_v47, 1  ;;  %vm95_vm11 = vcmp.eq.s32.totalorder %v87_v48, 1 }
  0x8d   :  { %v102_v49 = vsel %vm96_vm10, %v54_v45, 0.0  ;;  %v101_v50 = vsel %vm95_vm11, %v53_v46, 0.0 }
  0x8e   :  { %108 = vst [vmem:[%s208_s4 + $0x28] sm:$0xff] %v102_v49  ;;  %107 = vst [vmem:[%s208_s4 + $0x20] sm:$0xff] %v101_v50 }

// kernel: scaling_block_forward.4
= control target key start
LH: loop header
LB: loop body
LE: loop exit
PB: predicated region body
PF: predicated region fallthrough
CT: control target
= control target key end

     0   :  { %v28_v0 = vlaneseq  ;;  %v731_v4 = vmov 0   ;;  %vm54_vm0 = vcmask 523264   ;;  %vm498_vm3 = vcmask 1040384   ;;  %s961_s1 = inlined_call_operand.vmem [shape: f32[3,64,128], index: 1, kind: input, shape index: {}]   ;;  %s962_s0 = inlined_call_operand.vmem [shape: f32[48,64], index: 0, kind: input, shape index: {}]   ;;  %s963_s2 = inlined_call_operand.vmem [shape: f32[48,1], index: 2, kind: input, shape index: {}]   ;;  %s964_s3 = inlined_call_operand.vmem [shape: f32[48,128], index: 3, kind: output, shape index: {0}]   ;;  %s965_s4 = inlined_call_operand.vmem [shape: f32[1,2,128], index: 4, kind: output, shape index: {1}]  }
   0x1   :  { %v509_v1 = vld [vmem:[%s961_s1 + $0x40] sm:$0xff]  ;;  %v510_v2 = vld [vmem:[%s961_s1 + $0x48] sm:$0xff]  ;;  %729 = vset.pattern.permute.xlu0 %v731_v4  ;;  %730 = vset.pattern.permute.xlu1 %v731_v4  ;;  %v511_v7 = vld [vmem:[%s961_s1 + $0x50] sm:$0xff] }
   0x2   :  { %v37_v3 = vld [vmem:[%s961_s1] sm:$0xff]  ;;  %v660_v5 = vpack.c.bf16 %v510_v2, %v509_v1  ;;  %v38_v6 = vld [vmem:[%s961_s1 + $0x8] sm:$0xff]  ;;  %v512_v8 = vld [vmem:[%s961_s1 + $0x58] sm:$0xff]  ;;  %v775_v9 = vshrl.u32 %v28_v0, 7 }
   0x3   :  { %v676_v10 = vpack.c.bf16 %v38_v6, %v37_v3  ;;  %v664_v11 = vpack.c.bf16 %v512_v8, %v511_v7  ;;  %v39_v12 = vld [vmem:[%s961_s1 + $0x10] sm:$0xff]  ;;  %v40_v13 = vld [vmem:[%s961_s1 + $0x18] sm:$0xff]  ;;  %v513_v14 = vld [vmem:[%s961_s1 + $0x60] sm:$0xff] }
   0x4   :  { %661 = vmatprep.subr.bf16.mxu1 %v660_v5  ;;  %v680_v15 = vpack.c.bf16 %v40_v13, %v39_v12  ;;  %v514_v16 = vld [vmem:[%s961_s1 + $0x68] sm:$0xff]  ;;  %v41_v17 = vld [vmem:[%s961_s1 + $0x20] sm:$0xff]  ;;  %vm30_vm1 = vcmp.lt.s32.totalorder %v775_v9, 1  ;;  %v515_v23 = vld [vmem:[%s961_s1 + $0x70] sm:$0xff]  ;;  %vm287_vm2 = vcmp.lt.s32.totalorder %v775_v9, 7 }
   0x5   :  { %v42_v18 = vld [vmem:[%s961_s1 + $0x28] sm:$0xff]  ;;  %677 = vmatprep.subr.bf16.mxu0 %v676_v10  ;;  %663 = vmatpush3.bf16.msra.mxu1 %v660_v5  ;;  %v668_v19 = vpack.c.bf16 %v514_v16, %v513_v14  ;;  %v798_v20 = vld [vmem:[%s962_s0] sm:$0xff]  ;;  %v516_v24 = vld [vmem:[%s961_s1 + $0x78] sm:$0xff] }
   0x6   :  { %679 = vmatpush3.bf16.msra.mxu0 %v676_v10  ;;  %665 = vmatprep.subr.bf16.mxu1 %v664_v11  ;;  %v803_v21 = vld [vmem:[%s962_s0 + $0x28] sm:$0xff]  ;;  %v684_v22 = vpack.c.bf16 %v42_v18, %v41_v17  ;;  %v22_v25 = vrot.slane %v798_v20, 7  ;;  %v43_v27 = vld [vmem:[%s961_s1 + $0x30] sm:$0xff]  ;;  %v44_v28 = vld [vmem:[%s961_s1 + $0x38] sm:$0xff]  ;;  %v672_v30 = vpack.c.bf16 %v516_v24, %v515_v23  ;;  %v281_v59 = vrot.slane %v798_v20, 1 }
   0x7   :  { %681 = vmatprep.subr.bf16.mxu0 %v680_v15  ;;  %601 = vmatprep.mubr.msk.f32.mxu1 %vm54_vm0, %v798_v20  ;;  %v27_v26 = vrot.slane %v803_v21, 7  ;;  %v529_v31 = vld [vmem:[%s961_s1 + $0x80] sm:$0xff]  ;;  %v688_v32 = vpack.c.bf16 %v44_v28, %v43_v27  ;;  %v530_v33 = vld [vmem:[%s961_s1 + $0x88] sm:$0xff]  ;;  %v430_v36 = vld [vmem:[%s963_s2 + $0x10] sm:$0xff]  ;;  %v286_v6 = vrot.slane %v803_v21, 1 }
   0x8   :  { %v836_v34 = vld [vmem:[%s962_s0 + $0x8] sm:$0xff]  ;;  %v428_v35 = vld [vmem:[%s963_s2] sm:$0xff]  ;;  %v692_v38 = vpack.c.bf16 %v530_v33, %v529_v31  ;;  %v851_v40 = vld [vmem:[%s962_s0 + $0x10] sm:$0xff]  ;;  %446 = vperm.xlu1 %730, %v430_v36  }
   0x9   :  { %667 = vmatpush3.bf16.msra.mxu1 %v664_v11  ;;  %v36_v29 = vsel %vm30_vm1, %v27_v26, %v22_v25  ;;  %436 = vperm.xlu0 %729, %v428_v35   ;;  %v429_v37 = vld [vmem:[%s963_s2 + $0x8] sm:$0xff]  ;;  %v23_v39 = vrot.slane %v836_v34, 7  ;;  %v531_v41 = vld [vmem:[%s961_s1 + $0x90] sm:$0xff]  ;;  %v532_v42 = vld [vmem:[%s961_s1 + $0x98] sm:$0xff]  ;;  %v24_v45 = vrot.slane %v851_v40, 7  ;;  %v282_v60 = vrot.slane %v836_v34, 1 }
   0xa   :  { %683 = vmatpush3.bf16.msra.mxu0 %v680_v15  ;;  %669 = vmatprep.subr.bf16.mxu1 %v668_v19  ;;  %v862_v43 = vld [vmem:[%s962_s0 + $0x18] sm:$0xff]  ;;  %v432_v46 = vld [vmem:[%s963_s2 + $0x20] sm:$0xff]  ;;  %v696_v48 = vpack.c.bf16 %v532_v42, %v531_v41  ;;  %v534_v52 = vld [vmem:[%s961_s1 + $0xa8] sm:$0xff]  ;;  %v283_v61 = vrot.slane %v851_v40, 1  ;;  %v293_v11 = vsel %vm287_vm2, %v286_v6, %v281_v59 }
   0xb   :  { %685 = vmatprep.subr.bf16.mxu0 %v684_v22  ;;  %626 = vmatprep.mubr.msk.f32.mxu0 %vm54_vm0, %v36_v29  ;;  %v431_v44 = vld [vmem:[%s963_s2 + $0x18] sm:$0xff]  ;;  %v35_v47 = vsel %vm30_vm1, %v22_v25, %v23_v39  ;;  %v25_v49 = vrot.slane %v862_v43, 7  ;;  %v20_v50 = vld [vmem:[%s962_s0 + $0x20] sm:$0xff]  ;;  %v34_v53 = vsel %vm30_vm1, %v23_v39, %v24_v45  ;;  %v535_v57 = vld [vmem:[%s961_s1 + $0xb0] sm:$0xff]  ;;  %v284_v62 = vrot.slane %v862_v43, 1 }
   0xc   :  { %v533_v51 = vld [vmem:[%s961_s1 + $0xa0] sm:$0xff]  ;;  %451 = vperm.xlu1 %730, %v431_v44   ;;  %v26_v54 = vrot.slane %v20_v50, 7  ;;  %v536_v58 = vld [vmem:[%s961_s1 + $0xb8] sm:$0xff]  ;;  %v292_v2 = vsel %vm287_vm2, %v281_v59, %v282_v60  ;;  %v285_v3 = vrot.slane %v20_v50, 1  ;;  %v433_v5 = vld [vmem:[%s963_s2 + $0x28] sm:$0xff]  ;;  %v291_v8 = vsel %vm287_vm2, %v282_v60, %v283_v61 }
   0xd   :  { %671 = vmatpush3.bf16.msra.mxu1 %v668_v19  ;;  %441 = vperm.xlu0 %729, %v429_v37   ;;  %v33_v55 = vsel %vm30_vm1, %v24_v45, %v25_v49  ;;  %v700_v56 = vpack.c.bf16 %v534_v52, %v533_v51  ;;  %v704_v1 = vpack.c.bf16 %v536_v58, %v535_v57 }
   0xe   :  { %687 = vmatpush3.bf16.msra.mxu0 %v684_v22  ;;  %673 = vmatprep.subr.bf16.mxu1 %v672_v30  ;;  %v32_v63 = vsel %vm30_vm1, %v25_v49, %v26_v54  ;;  %v31_v0 = vsel %vm30_vm1, %v26_v54, %v27_v26  ;;  %v290_v4 = vsel %vm287_vm2, %v283_v61, %v284_v62 }
   0xf   :  { %689 = vmatprep.subr.bf16.mxu0 %v688_v32  ;;  %v289_v7 = vsel %vm287_vm2, %v284_v62, %v285_v3  ;;  %v288_v10 = vsel %vm287_vm2, %v285_v3, %v286_v6 }
  0x10   :  { %461 = vperm.xlu1 %730, %v433_v5  }
  0x11   :  { %675 = vmatpush3.bf16.msra.mxu1 %v672_v30  ;;  %456 = vperm.xlu0 %729, %v432_v46  }
  0x12   :  { %691 = vmatpush3.bf16.msra.mxu0 %v688_v32  ;;  %708 = vmatprep.subr.bf16.mxu1 %v692_v38 }
  0x13   :  { %693 = vmatprep.subr.bf16.mxu0 %v692_v38 }
  0x14   :  { %602 = vmatmul.mubr.msk.f32.vlgmr.msra.gmra.mrb[0].mxu1 %vm54_vm0, %v836_v34 }
  0x15   :  { %627 = vmatmul.mubr.msk.f32.vlgmr.msra.gmra.mrb[0].mxu0 %vm54_vm0, %v35_v47  ;;  %712 = vmatpush3.bf16.msra.mxu1 %v692_v38 }
  0x16   :  { %695 = vmatpush3.bf16.msra.mxu0 %v692_v38  ;;  %709 = vmatprep.subr.bf16.mxu1 %v696_v48 }
  0x17   :  { %697 = vmatprep.subr.bf16.mxu0 %v696_v48  ;;  %604 = vmatprep.mubr.msk.f32.mxu1 %vm54_vm0, %v851_v40 }
  0x18   :  { %629 = vmatprep.mubr.msk.f32.mxu0 %vm54_vm0, %v34_v53  ;;  %605 = vmatmul.mubr.msk.f32.gmra.mrb[2].mxu1 %vm54_vm0, %v862_v43 }
  0x19   :  { %713 = vmatpush3.bf16.msra.mxu1 %v696_v48  ;;  %630 = vmatmul.mubr.msk.f32.gmra.mrb[2].mxu0 %vm54_vm0, %v33_v55 }
  0x1a   :  { %699 = vmatpush3.bf16.msra.mxu0 %v696_v48  ;;  %710 = vmatprep.subr.bf16.mxu1 %v700_v56 }
  0x1b   :  { %701 = vmatprep.subr.bf16.mxu0 %v700_v56  ;;  %607 = vmatprep.mubr.msk.f32.mxu1 %vm54_vm0, %v20_v50 }
  0x1c   :  { %632 = vmatprep.mubr.msk.f32.mxu0 %vm54_vm0, %v32_v63  ;;  %608 = vmatmul.mubr.msk.f32.gmra.mrb[4].mxu1 %vm54_vm0, %v803_v21 }
  0x1d   :  { %714 = vmatpush3.bf16.msra.mxu1 %v700_v56  ;;  %633 = vmatmul.mubr.msk.f32.gmra.mrb[4].mxu0 %vm54_vm0, %v31_v0 }
  0x1e   :  { %703 = vmatpush3.bf16.msra.mxu0 %v700_v56  ;;  %711 = vmatprep.subr.bf16.mxu1 %v704_v1 }
  0x1f   :  { %705 = vmatprep.subr.bf16.mxu0 %v704_v1  ;;  %651 = vmatprep.mubr.msk.f32.mxu0 %vm54_vm0, %v292_v2 }
  0x20   :  { %654 = vmatprep.mubr.msk.f32.mxu1 %vm54_vm0, %v290_v4 }
  0x21   :  { %715 = vmatpush3.bf16.msra.mxu1 %v704_v1 }
  0x22   :  { %707 = vmatpush3.bf16.msra.mxu0 %v704_v1 }
  0x24   :  { %655 = vmatmul.mubr.msk.f32.vlgmr.msra.gmra.mrb[6].mxu1 %vm54_vm0, %v289_v7 }
  0x25   :  { %652 = vmatmul.mubr.msk.f32.vlgmr.msra.gmra.mrb[0].mxu0 %vm54_vm0, %v291_v8  ;;  %657 = vmatprep.mubr.msk.f32.mxu1 %vm54_vm0, %v288_v10 }
  0x28   :  { %658 = vmatmul.mubr.msk.f32.gmra.mrb[8].mxu1 %vm54_vm0, %v293_v11 }
  0x87   :  { %v447_v27 = vpop.permute.xlu1 %446 }
  0x88   :  { %v437_v26 = vpop.permute.xlu0 %436 }
  0x8b   :  { %v452_v36 = vpop.permute.xlu1 %451 }
  0x8c   :  { %v442_v31 = vpop.permute.xlu0 %441 }
  0x8f   :  { %v462_v53 = vpop.permute.xlu1 %461 }
  0x90   :  { %v457_v48 = vpop.permute.xlu0 %456 }
  0xe7   :  { %v603_v12 = vpop.f32.mrb[0].mxu1 }
  0xe8   :  { %v139_v13 = vpop.f32.mrb[1].mxu1 }
  0xeb   :  { %v606_v14 = vpop.f32.mrb[2].mxu1 }
  0xec   :  { %v631_v15 = vpop.f32.mrb[2].mxu0  ;;  %v149_v16 = vpop.f32.mrb[3].mxu1 }
  0xed   :  { %v268_v17 = vadd.f32 %v631_v15, %v606_v14  ;;  %v262_v18 = vpop.f32.mrb[3].mxu0 }
  0xee   :  { %v263_v19 = vadd.f32 %v262_v18, %v149_v16 }
  0xef   :  { %v609_v20 = vpop.f32.mrb[4].mxu1 }
  0xf0   :  { %v634_v21 = vpop.f32.mrb[4].mxu0  ;;  %v159_v22 = vpop.f32.mrb[5].mxu1 }
  0xf1   :  { %v278_v23 = vadd.f32 %v634_v21, %v609_v20  ;;  %v272_v24 = vpop.f32.mrb[5].mxu0 }
  0xf2   :  { %v273_v25 = vadd.f32 %v272_v24, %v159_v22 }
  0xf7   :  { %v656_v9 = vpop.f32.mrb[6].mxu1 }
  0xf8   :  { %v653_v28 = vpop.f32.mrb[0].mxu0  ;;  %v419_v29 = vadd.f32 %v656_v9, %v268_v17  ;;  %v397_v30 = vpop.f32.mrb[7].mxu1 }
  0xf9   :  { %v716_v32 = vadd.f32 %v653_v28, %v603_v12  ;;  %v387_v33 = vpop.f32.mrb[1].mxu0  ;;  %v418_v34 = vadd.f32 %v397_v30, %v263_v19 }
  0xfa   :  { %425 = vst [vmem:[%s964_s3 + $0x18] sm:$0xff] %v419_v29  ;;  %v717_v35 = vadd.f32 %v387_v33, %v139_v13  ;;  %v467_v45 = vmul.f32 %v452_v36, %v419_v29 }
  0xfb   :  { %423 = vst [vmem:[%s964_s3 + $0x8] sm:$0xff] %v716_v32  ;;  %v465_v37 = vmul.f32 %v716_v32, %v442_v31  ;;  %424 = vst [vmem:[%s964_s3 + $0x10] sm:$0xff] %v418_v34  ;;  %v659_v38 = vpop.f32.mrb[8].mxu1  ;;  %v466_v40 = vmul.f32 %v447_v27, %v418_v34 }
  0xfc   :  { %422 = vst [vmem:[%s964_s3] sm:$0xff] %v717_v35  ;;  %v464_v39 = vmul.f32 %v717_v35, %v437_v26  ;;  %v421_v41 = vadd.f32 %v659_v38, %v278_v23  ;;  %v407_v42 = vpop.f32.mrb[9].mxu1  ;;  %v484_v54 = vmul.f32 %v467_v45, %v419_v29 }
  0xfd   :  { %v482_v43 = vmul.f32 %v716_v32, %v465_v37  ;;  %v420_v44 = vadd.f32 %v407_v42, %v273_v25  ;;  %v483_v51 = vmul.f32 %v466_v40, %v418_v34 }
  0xfe   :  { %v470_v46 = vadd.f32 %v465_v37, %v464_v39  ;;  %v481_v47 = vmul.f32 %v717_v35, %v464_v39  ;;  %427 = vst [vmem:[%s964_s3 + $0x28] sm:$0xff] %v421_v41  ;;  %v469_v56 = vmul.f32 %v462_v53, %v421_v41 }
  0xff   :  { %426 = vst [vmem:[%s964_s3 + $0x20] sm:$0xff] %v420_v44  ;;  %v468_v52 = vmul.f32 %v457_v48, %v420_v44 }
 0x100   :  { %v487_v49 = vadd.f32 %v482_v43, %v481_v47  ;;  %v471_v50 = vadd.f32 %v470_v46, %v466_v40  ;;  %v486_v61 = vmul.f32 %v469_v56, %v421_v41 }
 0x101   :  { %v485_v59 = vmul.f32 %v468_v52, %v420_v44 }
 0x102   :  { %v488_v55 = vadd.f32 %v487_v49, %v483_v51  ;;  %v472_v57 = vadd.f32 %v471_v50, %v467_v45 }
 0x104   :  { %v473_v58 = vadd.f32 %v472_v57, %v468_v52  ;;  %v489_v60 = vadd.f32 %v488_v55, %v484_v54 }
 0x106   :  { %v474_v62 = vadd.f32 %v473_v58, %v469_v56  ;;  %v490_v63 = vadd.f32 %v489_v60, %v485_v59 }
 0x108   :  { %v475_v0 = vrot.slane %v474_v62, 4  ;;  %v491_v1 = vadd.f32 %v490_v63, %v486_v61 }
 0x10a   :  { %v476_v2 = vadd.f32 %v475_v0, %v474_v62  ;;  %v492_v3 = vrot.slane %v491_v1, 4 }
 0x10c   :  { %v477_v4 = vrot.slane %v476_v2, 2  ;;  %v493_v5 = vadd.f32 %v492_v3, %v491_v1 }
 0x10e   :  { %v478_v6 = vadd.f32 %v477_v4, %v476_v2  ;;  %v494_v7 = vrot.slane %v493_v5, 2 }
 0x110   :  { %v479_v8 = vrot.slane %v478_v6, 1  ;;  %v495_v10 = vadd.f32 %v494_v7, %v493_v5 }
 0x112   :  { %v496_v11 = vrot.slane %v495_v10, 1  ;;  %v480_v12 = vadd.f32 %v479_v8, %v478_v6 }
 0x114   :  { %v497_v13 = vadd.f32 %v496_v11, %v495_v10 }
 0x116   :  { %v499_v14 = vsel %vm498_vm3, %v480_v12, %v497_v13 }
 0x117   :  { %500 = vst [vmem:[%s965_s4] sm:$0x3] %v499_v14 }

// kernel: scaling_block_forward.6
= control target key start
LH: loop header
LB: loop body
LE: loop exit
PB: predicated region body
PF: predicated region fallthrough
CT: control target
= control target key end

     0   :  { %v826_v3 = vmov 0   ;;  %v28_v17 = vlaneseq  ;;  %vm467_vm2 = vcmask 1040384   ;;  %s1123_s1 = inlined_call_operand.vmem [shape: f32[3,128,128], index: 1, kind: input, shape index: {}]   ;;  %s1124_s0 = inlined_call_operand.vmem [shape: f32[48,128], index: 0, kind: input, shape index: {}]   ;;  %s1125_s2 = inlined_call_operand.vmem [shape: f32[48,1], index: 2, kind: input, shape index: {}]   ;;  %s1126_s3 = inlined_call_operand.vmem [shape: f32[48,128], index: 3, kind: output, shape index: {0}]   ;;  %s1127_s4 = inlined_call_operand.vmem [shape: f32[1,2,128], index: 4, kind: output, shape index: {1}]  }
   0x1   :  { %v478_v0 = vld [vmem:[%s1123_s1 + $0x80] sm:$0xff]  ;;  %v479_v1 = vld [vmem:[%s1123_s1 + $0x88] sm:$0xff]  ;;  %824 = vset.pattern.permute.xlu0 %v826_v3  ;;  %825 = vset.pattern.permute.xlu1 %v826_v3  ;;  %v480_v6 = vld [vmem:[%s1123_s1 + $0x90] sm:$0xff] }
   0x2   :  { %v37_v2 = vld [vmem:[%s1123_s1] sm:$0xff]  ;;  %v699_v4 = vpack.c.bf16 %v479_v1, %v478_v0  ;;  %v38_v5 = vld [vmem:[%s1123_s1 + $0x8] sm:$0xff]  ;;  %v481_v7 = vld [vmem:[%s1123_s1 + $0x98] sm:$0xff]  ;;  %v900_v24 = vshrl.u32 %v28_v17, 7 }
   0x3   :  { %v731_v8 = vpack.c.bf16 %v38_v5, %v37_v2  ;;  %v703_v9 = vpack.c.bf16 %v481_v7, %v480_v6  ;;  %v39_v10 = vld [vmem:[%s1123_s1 + $0x10] sm:$0xff]  ;;  %v40_v11 = vld [vmem:[%s1123_s1 + $0x18] sm:$0xff]  ;;  %v482_v12 = vld [vmem:[%s1123_s1 + $0xa0] sm:$0xff] }
   0x4   :  { %700 = vmatprep.subr.bf16.mxu1 %v699_v4  ;;  %v735_v13 = vpack.c.bf16 %v40_v11, %v39_v10  ;;  %v483_v14 = vld [vmem:[%s1123_s1 + $0xa8] sm:$0xff]  ;;  %v41_v15 = vld [vmem:[%s1123_s1 + $0x20] sm:$0xff]  ;;  %v484_v20 = vld [vmem:[%s1123_s1 + $0xb0] sm:$0xff]  ;;  %vm30_vm0 = vcmp.lt.s32.totalorder %v900_v24, 1  ;;  %vm266_vm1 = vcmp.lt.s32.totalorder %v900_v24, 7 }
   0x5   :  { %v42_v16 = vld [vmem:[%s1123_s1 + $0x28] sm:$0xff]  ;;  %732 = vmatprep.subr.bf16.mxu0 %v731_v8  ;;  %702 = vmatpush3.bf16.msra.mxu1 %v699_v4  ;;  %v707_v18 = vpack.c.bf16 %v483_v14, %v482_v12  ;;  %v485_v21 = vld [vmem:[%s1123_s1 + $0xb8] sm:$0xff]  ;;  %v43_v22 = vld [vmem:[%s1123_s1 + $0x30] sm:$0xff] }
   0x6   :  { %734 = vmatpush3.bf16.msra.mxu0 %v731_v8  ;;  %704 = vmatprep.subr.bf16.mxu1 %v703_v9  ;;  %v739_v19 = vpack.c.bf16 %v42_v16, %v41_v15  ;;  %v44_v23 = vld [vmem:[%s1123_s1 + $0x38] sm:$0xff]  ;;  %v711_v25 = vpack.c.bf16 %v485_v21, %v484_v20  ;;  %v486_v27 = vld [vmem:[%s1123_s1 + $0xc0] sm:$0xff]  ;;  %v487_v28 = vld [vmem:[%s1123_s1 + $0xc8] sm:$0xff] }
   0x7   :  { %736 = vmatprep.subr.bf16.mxu0 %v735_v13  ;;  %v743_v26 = vpack.c.bf16 %v44_v23, %v43_v22  ;;  %v911_v29 = vld [vmem:[%s1124_s0] sm:$0xff]  ;;  %v46_v31 = vld [vmem:[%s1123_s1 + $0x48] sm:$0xff]  ;;  %v715_v35 = vpack.c.bf16 %v487_v28, %v486_v27  ;;  %v488_v37 = vld [vmem:[%s1123_s1 + $0xd0] sm:$0xff] }
   0x8   :  { %v45_v30 = vld [vmem:[%s1123_s1 + $0x40] sm:$0xff]  ;;  %v22_v32 = vrot.slane %v911_v29, 7  ;;  %608 = vmatprep.mubr.f32.mxu1 %v911_v29  ;;  %v924_v33 = vld [vmem:[%s1124_s0 + $0x28] sm:$0xff]  ;;  %v489_v38 = vld [vmem:[%s1123_s1 + $0xd8] sm:$0xff]  ;;  %v260_v20 = vrot.slane %v911_v29, 1 }
   0x9   :  { %706 = vmatpush3.bf16.msra.mxu1 %v703_v9  ;;  %v27_v34 = vrot.slane %v924_v33, 7  ;;  %v747_v36 = vpack.c.bf16 %v46_v31, %v45_v30  ;;  %v47_v40 = vld [vmem:[%s1123_s1 + $0x50] sm:$0xff]  ;;  %v48_v41 = vld [vmem:[%s1123_s1 + $0x58] sm:$0xff]  ;;  %v719_v42 = vpack.c.bf16 %v489_v38, %v488_v37  ;;  %v490_v43 = vld [vmem:[%s1123_s1 + $0xe0] sm:$0xff] }
   0xa   :  { %738 = vmatpush3.bf16.msra.mxu0 %v735_v13  ;;  %708 = vmatprep.subr.bf16.mxu1 %v707_v18  ;;  %v751_v44 = vpack.c.bf16 %v48_v41, %v47_v40  ;;  %v491_v45 = vld [vmem:[%s1123_s1 + $0xe8] sm:$0xff]  ;;  %v397_v46 = vld [vmem:[%s1125_s2] sm:$0xff]  ;;  %v399_v47 = vld [vmem:[%s1125_s2 + $0x10] sm:$0xff] }
   0xb   :  { %740 = vmatprep.subr.bf16.mxu0 %v739_v19  ;;  %v36_v39 = vsel %vm30_vm0, %v27_v34, %v22_v32  ;;  %v49_v48 = vld [vmem:[%s1123_s1 + $0x60] sm:$0xff]  ;;  %v50_v49 = vld [vmem:[%s1123_s1 + $0x68] sm:$0xff]  ;;  %405 = vperm.xlu0 %824, %v397_v46   ;;  %v400_v51 = vld [vmem:[%s1125_s2 + $0x18] sm:$0xff]  ;;  %v723_v52 = vpack.c.bf16 %v491_v45, %v490_v43  ;;  %v265_v45 = vrot.slane %v924_v33, 1 }
   0xc   :  { %649 = vmatprep.mubr.f32.mxu0 %v36_v39  ;;  %415 = vperm.xlu1 %825, %v399_v47   ;;  %v398_v50 = vld [vmem:[%s1125_s2 + $0x8] sm:$0xff]  ;;  %v755_v53 = vpack.c.bf16 %v50_v49, %v49_v48  ;;  %v492_v54 = vld [vmem:[%s1123_s1 + $0xf0] sm:$0xff]  ;;  %v493_v55 = vld [vmem:[%s1123_s1 + $0xf8] sm:$0xff] }
   0xd   :  { %710 = vmatpush3.bf16.msra.mxu1 %v707_v18  ;;  %v51_v56 = vld [vmem:[%s1123_s1 + $0x70] sm:$0xff]  ;;  %v52_v57 = vld [vmem:[%s1123_s1 + $0x78] sm:$0xff]  ;;  %v401_v58 = vld [vmem:[%s1125_s2 + $0x20] sm:$0xff]  ;;  %v727_v60 = vpack.c.bf16 %v493_v55, %v492_v54 }
   0xe   :  { %742 = vmatpush3.bf16.msra.mxu0 %v739_v19  ;;  %712 = vmatprep.subr.bf16.mxu1 %v711_v25  ;;  %v402_v59 = vld [vmem:[%s1125_s2 + $0x28] sm:$0xff]  ;;  %v759_v61 = vpack.c.bf16 %v52_v57, %v51_v56  ;;  %v494_v62 = vld [vmem:[%s1123_s1 + $0x100] sm:$0xff]  ;;  %v1003_v3 = vld [vmem:[%s1124_s0 + $0x10] sm:$0xff] }
   0xf   :  { %744 = vmatprep.subr.bf16.mxu0 %v743_v26  ;;  %410 = vperm.xlu0 %824, %v398_v50   ;;  %v495_v63 = vld [vmem:[%s1123_s1 + $0x108] sm:$0xff]  ;;  %v496_v4 = vld [vmem:[%s1123_s1 + $0x110] sm:$0xff]  ;;  %v497_v5 = vld [vmem:[%s1123_s1 + $0x118] sm:$0xff]  ;;  %v24_v7 = vrot.slane %v1003_v3, 7  ;;  %v262_v22 = vrot.slane %v1003_v3, 1 }
  0x10   :  { %420 = vperm.xlu1 %825, %v400_v51   ;;  %v997_v0 = vld [vmem:[%s1124_s0 + $0x8] sm:$0xff]  ;;  %v763_v1 = vpack.c.bf16 %v495_v63, %v494_v62  ;;  %v1014_v6 = vld [vmem:[%s1124_s0 + $0x18] sm:$0xff]  ;;  %v767_v9 = vpack.c.bf16 %v497_v5, %v496_v4  ;;  %v1025_v11 = vld [vmem:[%s1124_s0 + $0x20] sm:$0xff] }
  0x11   :  { %714 = vmatpush3.bf16.msra.mxu1 %v711_v25  ;;  %v23_v2 = vrot.slane %v997_v0, 7  ;;  %v25_v10 = vrot.slane %v1014_v6, 7  ;;  %v498_v12 = vld [vmem:[%s1123_s1 + $0x120] sm:$0xff]  ;;  %v499_v13 = vld [vmem:[%s1123_s1 + $0x128] sm:$0xff]  ;;  %v26_v15 = vrot.slane %v1025_v11, 7  ;;  %v500_v18 = vld [vmem:[%s1123_s1 + $0x130] sm:$0xff] }
  0x12   :  { %746 = vmatpush3.bf16.msra.mxu0 %v743_v26  ;;  %716 = vmatprep.subr.bf16.mxu1 %v715_v35  ;;  %v771_v16 = vpack.c.bf16 %v499_v13, %v498_v12  ;;  %v501_v19 = vld [vmem:[%s1123_s1 + $0x138] sm:$0xff]  ;;  %v261_v21 = vrot.slane %v997_v0, 1  ;;  %v263_v23 = vrot.slane %v1014_v6, 1  ;;  %v502_v28 = vld [vmem:[%s1123_s1 + $0x140] sm:$0xff]  ;;  %v503_v30 = vld [vmem:[%s1123_s1 + $0x148] sm:$0xff] }
  0x13   :  { %748 = vmatprep.subr.bf16.mxu0 %v747_v36  ;;  %425 = vperm.xlu0 %824, %v401_v58   ;;  %v35_v8 = vsel %vm30_vm0, %v22_v32, %v23_v2  ;;  %v34_v14 = vsel %vm30_vm0, %v23_v2, %v24_v7  ;;  %v33_v17 = vsel %vm30_vm0, %v24_v7, %v25_v10  ;;  %v506_v38 = vld [vmem:[%s1123_s1 + $0x160] sm:$0xff]  ;;  %v507_v39 = vld [vmem:[%s1123_s1 + $0x168] sm:$0xff]  ;;  %v508_v41 = vld [vmem:[%s1123_s1 + $0x170] sm:$0xff] }
  0x14   :  { %430 = vperm.xlu1 %825, %v402_v59   ;;  %v32_v25 = vsel %vm30_vm0, %v25_v10, %v26_v15  ;;  %v775_v26 = vpack.c.bf16 %v501_v19, %v500_v18  ;;  %v31_v27 = vsel %vm30_vm0, %v26_v15, %v27_v34  ;;  %v271_v31 = vsel %vm266_vm1, %v260_v20, %v261_v21 }
  0x15   :  { %718 = vmatpush3.bf16.msra.mxu1 %v715_v35  ;;  %v269_v32 = vsel %vm266_vm1, %v262_v22, %v263_v23  ;;  %v779_v34 = vpack.c.bf16 %v503_v30, %v502_v28  ;;  %v504_v35 = vld [vmem:[%s1123_s1 + $0x150] sm:$0xff]  ;;  %v787_v40 = vpack.c.bf16 %v507_v39, %v506_v38  ;;  %v270_v47 = vsel %vm266_vm1, %v261_v21, %v262_v22 }
  0x16   :  { %750 = vmatpush3.bf16.msra.mxu0 %v747_v36  ;;  %720 = vmatprep.subr.bf16.mxu1 %v719_v42  ;;  %v505_v36 = vld [vmem:[%s1123_s1 + $0x158] sm:$0xff] }
  0x17   :  { %752 = vmatprep.subr.bf16.mxu0 %v751_v44  ;;  %v783_v37 = vpack.c.bf16 %v505_v36, %v504_v35 }
  0x19   :  { %722 = vmatpush3.bf16.msra.mxu1 %v719_v42  ;;  %v509_v42 = vld [vmem:[%s1123_s1 + $0x178] sm:$0xff] }
  0x1a   :  { %754 = vmatpush3.bf16.msra.mxu0 %v751_v44  ;;  %724 = vmatprep.subr.bf16.mxu1 %v723_v52  ;;  %v791_v43 = vpack.c.bf16 %v509_v42, %v508_v41  ;;  %v264_v44 = vrot.slane %v1025_v11, 1 }
  0x1b   :  { %756 = vmatprep.subr.bf16.mxu0 %v755_v53 }
  0x1c   :  { %v268_v46 = vsel %vm266_vm1, %v263_v23, %v264_v44  ;;  %v267_v48 = vsel %vm266_vm1, %v264_v44, %v265_v45 }
  0x1d   :  { %726 = vmatpush3.bf16.msra.mxu1 %v723_v52 }
  0x1e   :  { %758 = vmatpush3.bf16.msra.mxu0 %v755_v53  ;;  %728 = vmatprep.subr.bf16.mxu1 %v727_v60 }
  0x1f   :  { %760 = vmatprep.subr.bf16.mxu0 %v759_v61 }
  0x21   :  { %730 = vmatpush3.bf16.msra.mxu1 %v727_v60 }
  0x22   :  { %762 = vmatpush3.bf16.msra.mxu0 %v759_v61  ;;  %795 = vmatprep.subr.bf16.mxu1 %v763_v1 }
  0x23   :  { %764 = vmatprep.subr.bf16.mxu0 %v763_v1 }
  0x24   :  { %609 = vmatmul.mubr.f32.vlgmr.msra.gmra.mrb[0].mxu1 %v997_v0 }
  0x25   :  { %650 = vmatmul.mubr.f32.vlgmr.msra.gmra.mrb[0].mxu0 %v35_v8  ;;  %803 = vmatpush3.bf16.msra.mxu1 %v763_v1 }
  0x26   :  { %766 = vmatpush3.bf16.msra.mxu0 %v763_v1  ;;  %796 = vmatprep.subr.bf16.mxu1 %v767_v9 }
  0x27   :  { %768 = vmatprep.subr.bf16.mxu0 %v767_v9  ;;  %611 = vmatprep.mubr.f32.mxu1 %v1003_v3 }
  0x28   :  { %652 = vmatprep.mubr.f32.mxu0 %v34_v14  ;;  %612 = vmatmul.mubr.f32.gmra.mrb[2].mxu1 %v1014_v6 }
  0x29   :  { %804 = vmatpush3.bf16.msra.mxu1 %v767_v9  ;;  %653 = vmatmul.mubr.f32.gmra.mrb[2].mxu0 %v33_v17 }
  0x2a   :  { %770 = vmatpush3.bf16.msra.mxu0 %v767_v9  ;;  %797 = vmatprep.subr.bf16.mxu1 %v771_v16 }
  0x2b   :  { %772 = vmatprep.subr.bf16.mxu0 %v771_v16  ;;  %614 = vmatprep.mubr.f32.mxu1 %v1025_v11 }
  0x2c   :  { %655 = vmatprep.mubr.f32.mxu0 %v32_v25  ;;  %615 = vmatmul.mubr.f32.gmra.mrb[4].mxu1 %v924_v33  ;;  %v272_v33 = vsel %vm266_vm1, %v265_v45, %v260_v20 }
  0x2d   :  { %805 = vmatpush3.bf16.msra.mxu1 %v771_v16  ;;  %656 = vmatmul.mubr.f32.gmra.mrb[4].mxu0 %v31_v27 }
  0x2e   :  { %774 = vmatpush3.bf16.msra.mxu0 %v771_v16  ;;  %798 = vmatprep.subr.bf16.mxu1 %v775_v26 }
  0x2f   :  { %776 = vmatprep.subr.bf16.mxu0 %v775_v26  ;;  %690 = vmatprep.mubr.f32.mxu0 %v271_v31 }
  0x30   :  { %693 = vmatprep.mubr.f32.mxu1 %v269_v32 }
  0x31   :  { %806 = vmatpush3.bf16.msra.mxu1 %v775_v26 }
  0x32   :  { %778 = vmatpush3.bf16.msra.mxu0 %v775_v26  ;;  %799 = vmatprep.subr.bf16.mxu1 %v779_v34 }
  0x33   :  { %780 = vmatprep.subr.bf16.mxu0 %v779_v34 }
  0x35   :  { %807 = vmatpush3.bf16.msra.mxu1 %v779_v34 }
  0x36   :  { %782 = vmatpush3.bf16.msra.mxu0 %v779_v34  ;;  %800 = vmatprep.subr.bf16.mxu1 %v783_v37 }
  0x37   :  { %784 = vmatprep.subr.bf16.mxu0 %v783_v37 }
  0x39   :  { %808 = vmatpush3.bf16.msra.mxu1 %v783_v37 }
  0x3a   :  { %786 = vmatpush3.bf16.msra.mxu0 %v783_v37  ;;  %801 = vmatprep.subr.bf16.mxu1 %v787_v40 }
  0x3b   :  { %788 = vmatprep.subr.bf16.mxu0 %v787_v40 }
  0x3d   :  { %809 = vmatpush3.bf16.msra.mxu1 %v787_v40 }
  0x3e   :  { %790 = vmatpush3.bf16.msra.mxu0 %v787_v40  ;;  %802 = vmatprep.subr.bf16.mxu1 %v791_v43 }
  0x3f   :  { %792 = vmatprep.subr.bf16.mxu0 %v791_v43 }
  0x41   :  { %810 = vmatpush3.bf16.msra.mxu1 %v791_v43 }
  0x42   :  { %794 = vmatpush3.bf16.msra.mxu0 %v791_v43 }
  0x44   :  { %694 = vmatmul.mubr.f32.vlgmr.msra.gmra.mrb[6].mxu1 %v268_v46 }
  0x45   :  { %691 = vmatmul.mubr.f32.vlgmr.msra.gmra.mrb[0].mxu0 %v270_v47  ;;  %696 = vmatprep.mubr.f32.mxu1 %v267_v48 }
  0x48   :  { %697 = vmatmul.mubr.f32.gmra.mrb[8].mxu1 %v272_v33 }
  0x8a   :  { %v406_v63 = vpop.permute.xlu0 %405 }
  0x8b   :  { %v416_v29 = vpop.permute.xlu1 %415 }
  0x8e   :  { %v411_v3 = vpop.permute.xlu0 %410 }
  0x8f   :  { %v421_v8 = vpop.permute.xlu1 %420 }
  0x92   :  { %v426_v20 = vpop.permute.xlu0 %425 }
  0x93   :  { %v431_v26 = vpop.permute.xlu1 %430 }
  0xf7   :  { %v610_v49 = vpop.f32.mrb[0].mxu1 }
  0xf8   :  { %v136_v50 = vpop.f32.mrb[1].mxu1 }
  0xfb   :  { %v613_v51 = vpop.f32.mrb[2].mxu1 }
  0xfc   :  { %v654_v52 = vpop.f32.mrb[2].mxu0  ;;  %v146_v53 = vpop.f32.mrb[3].mxu1 }
  0xfd   :  { %v247_v54 = vadd.f32 %v654_v52, %v613_v51  ;;  %v241_v55 = vpop.f32.mrb[3].mxu0 }
  0xfe   :  { %v242_v56 = vadd.f32 %v241_v55, %v146_v53 }
  0xff   :  { %v616_v57 = vpop.f32.mrb[4].mxu1 }
 0x100   :  { %v657_v58 = vpop.f32.mrb[4].mxu0  ;;  %v156_v59 = vpop.f32.mrb[5].mxu1 }
 0x101   :  { %v257_v60 = vadd.f32 %v657_v58, %v616_v57  ;;  %v251_v61 = vpop.f32.mrb[5].mxu0 }
 0x102   :  { %v252_v62 = vadd.f32 %v251_v61, %v156_v59 }
 0x117   :  { %v695_v0 = vpop.f32.mrb[6].mxu1 }
 0x118   :  { %v692_v24 = vpop.f32.mrb[0].mxu0  ;;  %v388_v1 = vadd.f32 %v695_v0, %v247_v54  ;;  %v366_v2 = vpop.f32.mrb[7].mxu1 }
 0x119   :  { %v811_v4 = vadd.f32 %v692_v24, %v610_v49  ;;  %v356_v5 = vpop.f32.mrb[1].mxu0  ;;  %v387_v6 = vadd.f32 %v366_v2, %v242_v56 }
 0x11a   :  { %394 = vst [vmem:[%s1126_s3 + $0x18] sm:$0xff] %v388_v1  ;;  %v812_v7 = vadd.f32 %v356_v5, %v136_v50  ;;  %v436_v17 = vmul.f32 %v421_v8, %v388_v1 }
 0x11b   :  { %392 = vst [vmem:[%s1126_s3 + $0x8] sm:$0xff] %v811_v4  ;;  %v434_v9 = vmul.f32 %v811_v4, %v411_v3  ;;  %393 = vst [vmem:[%s1126_s3 + $0x10] sm:$0xff] %v387_v6  ;;  %v698_v10 = vpop.f32.mrb[8].mxu1  ;;  %v435_v12 = vmul.f32 %v416_v29, %v387_v6 }
 0x11c   :  { %391 = vst [vmem:[%s1126_s3] sm:$0xff] %v812_v7  ;;  %v433_v11 = vmul.f32 %v812_v7, %v406_v63  ;;  %v390_v13 = vadd.f32 %v698_v10, %v257_v60  ;;  %v376_v14 = vpop.f32.mrb[9].mxu1  ;;  %v453_v27 = vmul.f32 %v436_v17, %v388_v1 }
 0x11d   :  { %v451_v15 = vmul.f32 %v811_v4, %v434_v9  ;;  %v389_v16 = vadd.f32 %v376_v14, %v252_v62  ;;  %v452_v23 = vmul.f32 %v435_v12, %v387_v6 }
 0x11e   :  { %v439_v18 = vadd.f32 %v434_v9, %v433_v11  ;;  %v450_v19 = vmul.f32 %v812_v7, %v433_v11  ;;  %396 = vst [vmem:[%s1126_s3 + $0x28] sm:$0xff] %v390_v13  ;;  %v438_v30 = vmul.f32 %v431_v26, %v390_v13 }
 0x11f   :  { %395 = vst [vmem:[%s1126_s3 + $0x20] sm:$0xff] %v389_v16  ;;  %v437_v25 = vmul.f32 %v426_v20, %v389_v16 }
 0x120   :  { %v456_v21 = vadd.f32 %v451_v15, %v450_v19  ;;  %v440_v22 = vadd.f32 %v439_v18, %v435_v12  ;;  %v455_v36 = vmul.f32 %v438_v30, %v390_v13 }
 0x121   :  { %v454_v34 = vmul.f32 %v437_v25, %v389_v16 }
 0x122   :  { %v457_v28 = vadd.f32 %v456_v21, %v452_v23  ;;  %v441_v31 = vadd.f32 %v440_v22, %v436_v17 }
 0x124   :  { %v442_v32 = vadd.f32 %v441_v31, %v437_v25  ;;  %v458_v35 = vadd.f32 %v457_v28, %v453_v27 }
 0x126   :  { %v443_v37 = vadd.f32 %v442_v32, %v438_v30  ;;  %v459_v38 = vadd.f32 %v458_v35, %v454_v34 }
 0x128   :  { %v444_v39 = vrot.slane %v443_v37, 4  ;;  %v460_v40 = vadd.f32 %v459_v38, %v455_v36 }
 0x12a   :  { %v445_v41 = vadd.f32 %v444_v39, %v443_v37  ;;  %v461_v42 = vrot.slane %v460_v40, 4 }
 0x12c   :  { %v446_v43 = vrot.slane %v445_v41, 2  ;;  %v462_v44 = vadd.f32 %v461_v42, %v460_v40 }
 0x12e   :  { %v447_v45 = vadd.f32 %v446_v43, %v445_v41  ;;  %v463_v46 = vrot.slane %v462_v44, 2 }
 0x130   :  { %v448_v47 = vrot.slane %v447_v45, 1  ;;  %v464_v48 = vadd.f32 %v463_v46, %v462_v44 }
 0x132   :  { %v465_v33 = vrot.slane %v464_v48, 1  ;;  %v449_v49 = vadd.f32 %v448_v47, %v447_v45 }
 0x134   :  { %v466_v50 = vadd.f32 %v465_v33, %v464_v48 }
 0x136   :  { %v468_v51 = vsel %vm467_vm2, %v449_v49, %v466_v50 }
 0x137   :  { %469 = vst [vmem:[%s1127_s4] sm:$0x3] %v468_v51 }

</bundles_post_ra>
